<compile_context>
chip_gen: v7x
topology: tpu7x:2x2x1
jax: 0.10.0
libtpu: 0.0.40
codegen_flags: <defaults>
</compile_context>

<pallas_src>
import functools
import math

import jax
import jax.numpy as jnp
from jax.experimental import pallas as pl
from jax.experimental.pallas import tpu as pltpu  # noqa: F401  (TPU backend)


def _gc_kernel(x_ref, adj_ref, w_ref, b_ref, o_ref, *, batch):
    # x_ref:   (B, N, F_in)   node features
    # adj_ref: (N, N)         shared adjacency
    # w_ref:   (F_in, F_out)  weight
    # b_ref:   (1, F_out)     bias
    # o_ref:   (B, N, F_out)
    adj = adj_ref[...]
    w = w_ref[...]
    b = b_ref[...]
    # Static unroll over the (tiny) batch: each iteration is two small 2D
    # MXU matmuls, no in-kernel transpose/broadcast needed.
    for i in range(batch):
        t = jnp.dot(adj, x_ref[i], preferred_element_type=jnp.float32)   # (N, F_in)
        out = jnp.dot(t, w, preferred_element_type=jnp.float32)          # (N, F_out)
        o_ref[i] = (out + b).astype(o_ref.dtype)


def gc_forward(x, adj, weight, bias):
    """Graph conv: (adj @ (x @ weight)) + bias, batched over leading dim of x."""
    B, N, F_in = x.shape
    F_out = weight.shape[1]
    b2d = bias.reshape(1, F_out)  # only wrapper-side layout op

    flops = 2 * B * (N * N * F_in + N * F_in * F_out)
    bytes_accessed = 4 * (x.size + adj.size + weight.size + b2d.size
                          + B * N * F_out)

    return pl.pallas_call(
        functools.partial(_gc_kernel, batch=B),
        out_shape=jax.ShapeDtypeStruct((B, N, F_out), x.dtype),
        cost_estimate=pl.CostEstimate(
            flops=flops, transcendentals=0, bytes_accessed=bytes_accessed
        ),
    )(x, adj, weight, b2d)


def gc_reference(x, adj, weight, bias):
    support = jnp.einsum("bnf,fo->bno", x, weight)
    out = jnp.einsum("nm,bmo->bno", adj, support)
    return out + bias


if __name__ == "__main__":
    # Small shapes consistent with the module's forward.
    B, N, F_in, F_out = 2, 24, 32, 64

    key = jax.random.PRNGKey(0)
    k_x, k_w, k_b, k_a = jax.random.split(key, 4)

    # Deterministic parameter init mirroring reset_parameters():
    # uniform(-stdv, stdv) with stdv = 6 / sqrt(F_in + F_out).
    stdv = 6.0 / math.sqrt(F_in + F_out)
    weight = jax.random.uniform(
        k_w, (F_in, F_out), minval=-stdv, maxval=stdv, dtype=jnp.float32
    )
    bias = jax.random.uniform(
        k_b, (F_out,), minval=-stdv, maxval=stdv, dtype=jnp.float32
    )

    # Deterministic row-normalized adjacency (self-loops + dense random mask).
    a_raw = (jax.random.uniform(k_a, (N, N)) > 0.7).astype(jnp.float32)
    a_raw = a_raw + jnp.eye(N, dtype=jnp.float32)
    adj = a_raw / jnp.sum(a_raw, axis=1, keepdims=True)

    x = jax.random.normal(k_x, (B, N, F_in), dtype=jnp.float32)

    out = jax.jit(gc_forward)(x, adj, weight, bias)
    out = jax.block_until_ready(out)

    ref = gc_reference(x, adj, weight, bias)
    assert out.shape == (B, N, F_out), out.shape
    assert jnp.allclose(out, ref, atol=1e-4, rtol=1e-4), (
        float(jnp.max(jnp.abs(out - ref)))
    )

    print("KERNEL_OK")
</pallas_src>

<mosaic_0001>
module attributes {stable_mosaic.version = 11 : i64} {
  func.func @_gc_kernel(%arg0: memref<2x24x32xf32, #tpu.memory_space<vmem>>, %arg1: memref<24x24xf32, #tpu.memory_space<vmem>>, %arg2: memref<32x64xf32, #tpu.memory_space<vmem>>, %arg3: memref<1x64xf32, #tpu.memory_space<vmem>>, %arg4: memref<2x24x64xf32, #tpu.memory_space<vmem>>) attributes {dimension_semantics = [], scalar_prefetch = 0 : i64, scratch_operands = 0 : i64, tpu.core_type = #tpu.core_type<tc>} {
    %c0 = arith.constant 0 : index
    %c0_0 = arith.constant 0 : index
    %0 = vector.load %arg1[%c0, %c0_0] : memref<24x24xf32, #tpu.memory_space<vmem>>, vector<24x24xf32>
    %c0_1 = arith.constant 0 : index
    %c0_2 = arith.constant 0 : index
    %1 = vector.load %arg2[%c0_1, %c0_2] : memref<32x64xf32, #tpu.memory_space<vmem>>, vector<32x64xf32>
    %c0_3 = arith.constant 0 : index
    %c0_4 = arith.constant 0 : index
    %2 = vector.load %arg3[%c0_3, %c0_4] : memref<1x64xf32, #tpu.memory_space<vmem>>, vector<1x64xf32>
    %c0_5 = arith.constant 0 : index
    %c0_6 = arith.constant 0 : index
    %c0_7 = arith.constant 0 : index
    %3 = vector.load %arg0[%c0_5, %c0_6, %c0_7] : memref<2x24x32xf32, #tpu.memory_space<vmem>>, vector<1x24x32xf32>
    %4 = vector.shape_cast %3 : vector<1x24x32xf32> to vector<24x32xf32>
    %cst = arith.constant dense<0.000000e+00> : vector<24x32xf32>
    %5 = tpu.matmul %0, %4, %cst {dimension_numbers = #tpu.dot_dimension_numbers<[1], [0], [0], [1], [0, 0, 1, 1], [], []>} : vector<24x24xf32>, vector<24x32xf32>, vector<24x32xf32> -> vector<24x32xf32>
    %cst_8 = arith.constant dense<0.000000e+00> : vector<24x64xf32>
    %6 = tpu.matmul %5, %1, %cst_8 {dimension_numbers = #tpu.dot_dimension_numbers<[1], [0], [0], [1], [0, 0, 1, 1], [], []>} : vector<24x32xf32>, vector<32x64xf32>, vector<24x64xf32> -> vector<24x64xf32>
    %7 = vector.broadcast %2 : vector<1x64xf32> to vector<24x64xf32>
    %8 = arith.addf %6, %7 : vector<24x64xf32>
    %c0_9 = arith.constant 0 : index
    %c0_10 = arith.constant 0 : index
    %c0_11 = arith.constant 0 : index
    %9 = vector.load %arg4[%c0_9, %c0_10, %c0_11] : memref<2x24x64xf32, #tpu.memory_space<vmem>>, vector<1x24x64xf32>
    %10 = vector.shape_cast %9 : vector<1x24x64xf32> to vector<24x64xf32>
    %11 = vector.shape_cast %8 : vector<24x64xf32> to vector<1x24x64xf32>
    tpu.vector_store %arg4[%c0_9, %c0_10, %c0_11], %11 {strides = array<i32>} : memref<2x24x64xf32, #tpu.memory_space<vmem>>, vector<1x24x64xf32>,
    %c1 = arith.constant 1 : index
    %c0_12 = arith.constant 0 : index
    %c0_13 = arith.constant 0 : index
    %12 = vector.load %arg0[%c1, %c0_12, %c0_13] : memref<2x24x32xf32, #tpu.memory_space<vmem>>, vector<1x24x32xf32>
    %13 = vector.shape_cast %12 : vector<1x24x32xf32> to vector<24x32xf32>
    %cst_14 = arith.constant dense<0.000000e+00> : vector<24x32xf32>
    %14 = tpu.matmul %0, %13, %cst_14 {dimension_numbers = #tpu.dot_dimension_numbers<[1], [0], [0], [1], [0, 0, 1, 1], [], []>} : vector<24x24xf32>, vector<24x32xf32>, vector<24x32xf32> -> vector<24x32xf32>
    %cst_15 = arith.constant dense<0.000000e+00> : vector<24x64xf32>
    %15 = tpu.matmul %14, %1, %cst_15 {dimension_numbers = #tpu.dot_dimension_numbers<[1], [0], [0], [1], [0, 0, 1, 1], [], []>} : vector<24x32xf32>, vector<32x64xf32>, vector<24x64xf32> -> vector<24x64xf32>
    %16 = vector.broadcast %2 : vector<1x64xf32> to vector<24x64xf32>
    %17 = arith.addf %15, %16 : vector<24x64xf32>
    %c1_16 = arith.constant 1 : index
    %c0_17 = arith.constant 0 : index
    %c0_18 = arith.constant 0 : index
    %18 = vector.load %arg4[%c1_16, %c0_17, %c0_18] : memref<2x24x64xf32, #tpu.memory_space<vmem>>, vector<1x24x64xf32>
    %19 = vector.shape_cast %18 : vector<1x24x64xf32> to vector<24x64xf32>
    %20 = vector.shape_cast %17 : vector<24x64xf32> to vector<1x24x64xf32>
    tpu.vector_store %arg4[%c1_16, %c0_17, %c0_18], %20 {strides = array<i32>} : memref<2x24x64xf32, #tpu.memory_space<vmem>>, vector<1x24x64xf32>,
    return
  }
}

</mosaic_0001>

<bundles_post_ra>
// kernel: gc_forward.1
= control target key start
LH: loop header
LB: loop body
LE: loop exit
PB: predicated region body
PF: predicated region fallthrough
CT: control target
= control target key end

     0   :  { %9 = vsyncpa [#allocation3], 0  ;;  %s827_s0 = inlined_call_operand.hbm [shape: f32[2,24,32], index: 0, kind: input, shape index: {}]   ;;  %s828_s1 = inlined_call_operand.hbm [shape: f32[24,24], index: 1, kind: input, shape index: {}]   ;;  %s829_s2 = inlined_call_operand.hbm [shape: f32[32,64], index: 2, kind: input, shape index: {}]   ;;  %s830_s3 = inlined_call_operand.vmem [shape: f32[1,64], index: 3, kind: input, shape index: {}]   ;;  %s831_s4 = inlined_call_operand.hbm [shape: f32[2,24,64], index: 4, kind: output, shape index: {}]  }
   0x1   :  { %10 = vsyncpa [#allocation6], 0 }
   0x2   :  { %11 = vsyncpa [#allocation4], 0  ;;  %s679_s15 = smov [#allocation5]   ;;  %s680_s17 = smov [#allocation2]  }
   0x3   :  { %s29_s16 = sshll.u32 %s679_s15, 4  ;;  %s17_s18 = sshll.u32 %s680_s17, 4  ;;  %s30_s16 = int_to_ptr.vmem [resolvable:$true] %s29_s16  ;;  %s713_s18 = int_to_ptr.vmem [resolvable:$true] %s17_s18 }
   0x4   :  { %s585_s21 = scalar_lea.hbm %s828_s1, 384 }
   0x5   :  { %p586_p0 = scmp.ne.s32.totalorder %s828_s1, %s585_s21  ;;  %p589_p1 = scmp.lt.u32.totalorder %s585_s21, %s828_s1 }
   0x7   :  { %p591_p2 = pnand %p589_p1, %p586_p0 }
   0x9   :  { %594 = shalt.err (!%p591_p2)
}
   0xa   :  { %s595_s26 = scalar_lea.vmem %s30_s16, 384  ;;  %p600_p4 = scmp.lt.s32.totalorder %s30_s16, %s30_s16 }
   0xb   :  { %p596_p3 = scmp.ne.s32.totalorder %s30_s16, %s595_s26  ;;  %p601_p5 = scmp.lt.s32.totalorder %s595_s26, %s595_s26 }
   0xd   :  { %p602_p6 = por %p601_p5, %p600_p4 }
   0xf   :  { %p603_p7 = pnand %p602_p6, %p596_p3 }
  0x11   :  { %606 = shalt.err (!%p603_p7)
}
  0x12   :  { %s681_s27 = smov 128   ;;  %s682_s28 = smov 8  }
  0x13   :  { %35 = dma.hbm_to_vmem [thread:$0]  %s828_s1, 384, %s30_s16, [#allocation6], %s681_s27, %s681_s27, %s682_s28  }
  0x14   :  { %s607_s7 = scalar_lea.hbm %s827_s0, 768 }
  0x15   :  { %p608_p8 = scmp.ne.s32.totalorder %s827_s0, %s607_s7  ;;  %p611_p9 = scmp.lt.u32.totalorder %s607_s7, %s827_s0 }
  0x17   :  { %p613_p10 = pnand %p611_p9, %p608_p8 }
  0x19   :  { %616 = shalt.err (!%p613_p10)
}
  0x1a   :  { %s617_s12 = scalar_lea.vmem %s713_s18, 768  ;;  %p622_p12 = scmp.lt.s32.totalorder %s713_s18, %s713_s18 }
  0x1b   :  { %p618_p11 = scmp.ne.s32.totalorder %s713_s18, %s617_s12  ;;  %p623_p13 = scmp.lt.s32.totalorder %s617_s12, %s617_s12 }
  0x1d   :  { %p624_p0 = por %p623_p13, %p622_p12 }
  0x1f   :  { %p625_p1 = pnand %p624_p0, %p618_p11 }
  0x21   :  { %628 = shalt.err (!%p625_p1)
}
  0x22   :  { %23 = dma.hbm_to_vmem [thread:$0]  %s827_s0, 768, %s713_s18, [#allocation3], %s681_s27, %s681_s27, %s682_s28  }
  0x23   :  { %s683_s14 = smov [#allocation7]   ;;  %s629_s19 = scalar_lea.hbm %s829_s2, 512 }
  0x24   :  { %s41_s15 = sshll.u32 %s683_s14, 4  ;;  %p630_p2 = scmp.ne.s32.totalorder %s829_s2, %s629_s19  ;;  %s42_s15 = int_to_ptr.vmem [resolvable:$true] %s41_s15 }
  0x25   :  { %p633_p3 = scmp.lt.u32.totalorder %s629_s19, %s829_s2 }
  0x27   :  { %p635_p4 = pnand %p633_p3, %p630_p2 }
  0x29   :  { %638 = shalt.err (!%p635_p4)
}
  0x2a   :  { %s639_s24 = scalar_lea.vmem %s42_s15, 512  ;;  %p644_p6 = scmp.lt.s32.totalorder %s42_s15, %s42_s15 }
  0x2b   :  { %p640_p5 = scmp.ne.s32.totalorder %s42_s15, %s639_s24  ;;  %p645_p7 = scmp.lt.s32.totalorder %s639_s24, %s639_s24 }
  0x2d   :  { %p646_p8 = por %p645_p7, %p644_p6 }
  0x2f   :  { %p647_p9 = pnand %p646_p8, %p640_p5 }
  0x31   :  { %650 = shalt.err (!%p647_p9)
}
  0x32   :  { %47 = dma.hbm_to_vmem [thread:$0]  %s829_s2, 512, %s42_s15, [#allocation6], %s681_s27, %s681_s27, %s682_s28  }
  0x33   :  { %673 = dma.done.wait [#allocation3], 768  }
  0x34   :  { %674 = vsyncadd [#allocation3], 4294966528 }
  0x35   :  { %675 = dma.done.wait [#allocation6], 896  }
  0x36   :  { %676 = vsyncadd [#allocation6], 4294966400  ;;  %v684_v0 = vmov 0.0|0.0   ;;  %vm685_vm0 = vmmov 0   ;;  %v686_v1 = vmov 0.0   ;;  %v67_v2 = vld [vmem:[#allocation2] sm:$0xff] }
  0x37   :  { %558 = vmatprep.subr.bf16.mxu0 %v684_v0  ;;  %500 = vmatprep.mubr.msk.f32.mxu0 %vm685_vm0, %v686_v1  ;;  %v68_v3 = vld [vmem:[#allocation2 + $0x8] sm:$0xff]  ;;  %v261_v5 = vld [vmem:[#allocation2 + $0x18] sm:$0xff]  ;;  %v262_v6 = vld [vmem:[#allocation2 + $0x20] sm:$0xff]  ;;  %vm70_vm1 = vcmask 195584   ;;  %vm166_vm2 = vcmask 261120   ;;  %vm256_vm3 = vcmask 523264  }
  0x38   :  { %561 = vmatprep.subr.bf16.mxu1 %v684_v0  ;;  %517 = vmatprep.mubr.msk.f32.mxu1 %vm685_vm0, %v686_v1  ;;  %v559_v4 = vpack.c.bf16 %v68_v3, %v67_v2  ;;  %v62_v7 = vld [vmem:[#allocation7] sm:$0xff]  ;;  %v63_v8 = vld [vmem:[#allocation7 + $0x8] sm:$0xff]  ;;  %v64_v9 = vld [vmem:[#allocation7 + $0x10] sm:$0xff]  ;;  %v568_v14 = vpack.c.bf16 %v262_v6, %v261_v5 }
  0x39   :  { %v69_v10 = vld [vmem:[#allocation2 + $0x10] sm:$0xff]  ;;  %v562_v11 = vpack.c.bf16 %v63_v8, %v62_v7  ;;  %v65_v12 = vld [vmem:[#allocation7 + $0x18] sm:$0xff]  ;;  %v60_v16 = vld [vmem:[#allocation5 + $0x8] sm:$0xff] }
  0x3a   :  { %560 = vmatpush3.bf16.msra.mxu0 %v559_v4  ;;  %v59_v13 = vld [vmem:[#allocation5] sm:$0xff]  ;;  %v565_v15 = vpack.c.bf16 %v65_v12, %v64_v9  ;;  %v263_v17 = vld [vmem:[#allocation2 + $0x28] sm:$0xff]  ;;  %v61_v18 = vld [vmem:[#allocation5 + $0x10] sm:$0xff] }
  0x3b   :  { %498 = vmatprep.subr.mxu0 %v686_v1  ;;  %563 = vmatpush3.bf16.msra.mxu1 %v562_v11  ;;  %v458_v31 = vld [vmem:[%s830_s3] ss:$0 sm:$0xff]  ;;  %s687_s3 = smov [#allocation8]  }
  0x3c   :  { %564 = vmatprep.subr.bf16.mxu1 %v684_v0  ;;  %s442_s26 = sshll.u32 %s687_s3, 4  ;;  %s443_s26 = int_to_ptr.vmem [resolvable:$true] %s442_s26 }
  0x3d   :  { %s651_s29 = scalar_lea.vmem %s443_s26, 768  ;;  %p656_p11 = scmp.lt.s32.totalorder %s443_s26, %s443_s26 }
  0x3e   :  { %499 = vmatpush3.msra.mxu0 %v69_v10  ;;  %p652_p10 = scmp.ne.s32.totalorder %s443_s26, %s651_s29  ;;  %p657_p12 = scmp.lt.s32.totalorder %s651_s29, %s651_s29 }
  0x3f   :  { %501 = vmatmul.mubr.msk.f32.vlgmr.msra.gmra.mrb[0].mxu0 %vm70_vm1, %v59_v13  ;;  %567 = vmatprep.subr.bf16.mxu0 %v684_v0 }
  0x40   :  { %569 = vmatpush3.bf16.msra.mxu0 %v568_v14  ;;  %503 = vmatprep.mubr.msk.f32.mxu0 %vm685_vm0, %v686_v1  ;;  %p658_p13 = por %p657_p12, %p656_p11 }
  0x41   :  { %530 = vmatprep.subr.mxu0 %v686_v1  ;;  %566 = vmatpush3.bf16.msra.mxu1 %v565_v15 }
  0x42   :  { %570 = vmatprep.subr.bf16.mxu1 %v684_v0  ;;  %p659_p0 = pnand %p658_p13, %p652_p10 }
  0x43   :  { %504 = vmatmul.mubr.msk.f32.gmra.mrb[2].mxu0 %vm70_vm1, %v60_v16 }
  0x44   :  { %506 = vmatprep.mubr.msk.f32.mxu0 %vm685_vm0, %v686_v1  ;;  %531 = vmatpush3.msra.mxu0 %v263_v17 }
  0x47   :  { %507 = vmatmul.mubr.msk.f32.gmra.mrb[4].mxu0 %vm70_vm1, %v61_v18 }
  0x48   :  { %532 = vmatprep.mubr.msk.f32.mxu0 %vm685_vm0, %v686_v1 }
  0x4b   :  { %533 = vmatmul.mubr.msk.f32.vlgmr.msra.gmra.mrb[6].mxu0 %vm70_vm1, %v59_v13 }
  0x4c   :  { %535 = vmatprep.mubr.msk.f32.mxu0 %vm685_vm0, %v686_v1 }
  0x4f   :  { %536 = vmatmul.mubr.msk.f32.gmra.mrb[8].mxu0 %vm70_vm1, %v60_v16 }
  0x50   :  { %538 = vmatprep.mubr.msk.f32.mxu0 %vm685_vm0, %v686_v1 }
  0x53   :  { %539 = vmatmul.mubr.msk.f32.gmra.mrb[10].mxu0 %vm70_vm1, %v61_v18 }
 0x112   :  { %v146_v19 = vpop.f32.mrb[0].mxu0 }
 0x113   :  { %v502_v20 = vpop.f32.mrb[1].mxu0  ;;  %518 = vmatmul.mubr.msk.f32.vlgmr.msra.gmra.mrb[0].mxu1 %vm166_vm2, %v146_v19 }
 0x114   :  { %572 = vmatpush3.bf16.msra.mxu1 %v562_v11  ;;  %520 = vmatprep.mubr.msk.f32.mxu1 %vm685_vm0, %v686_v1 }
 0x115   :  { %573 = vmatprep.subr.bf16.mxu1 %v684_v0 }
 0x116   :  { %v151_v21 = vpop.f32.mrb[2].mxu0 }
 0x117   :  { %v505_v22 = vpop.f32.mrb[3].mxu0  ;;  %521 = vmatmul.mubr.msk.f32.gmra.mrb[2].mxu1 %vm166_vm2, %v151_v21 }
 0x118   :  { %523 = vmatprep.mubr.msk.f32.mxu1 %vm685_vm0, %v686_v1  ;;  %575 = vmatpush3.bf16.msra.mxu1 %v565_v15 }
 0x11a   :  { %v156_v23 = vpop.f32.mrb[4].mxu0 }
 0x11b   :  { %v508_v24 = vpop.f32.mrb[5].mxu0  ;;  %524 = vmatmul.mubr.msk.f32.gmra.mrb[4].mxu1 %vm166_vm2, %v156_v23 }
 0x11c   :  { %549 = vmatprep.mubr.msk.f32.mxu1 %vm685_vm0, %v686_v1 }
 0x11e   :  { %v330_v25 = vpop.f32.mrb[6].mxu0 }
 0x11f   :  { %v534_v26 = vpop.f32.mrb[7].mxu0  ;;  %550 = vmatmul.mubr.msk.f32.vlgmr.msra.gmra.mrb[6].mxu1 %vm166_vm2, %v330_v25 }
 0x120   :  { %552 = vmatprep.mubr.msk.f32.mxu1 %vm685_vm0, %v686_v1 }
 0x122   :  { %v335_v27 = vpop.f32.mrb[8].mxu0 }
 0x123   :  { %v537_v28 = vpop.f32.mrb[9].mxu0  ;;  %553 = vmatmul.mubr.msk.f32.gmra.mrb[8].mxu1 %vm166_vm2, %v335_v27 }
 0x124   :  { %555 = vmatprep.mubr.msk.f32.mxu1 %vm685_vm0, %v686_v1 }
 0x126   :  { %v340_v29 = vpop.f32.mrb[10].mxu0 }
 0x127   :  { %v540_v30 = vpop.f32.mrb[11].mxu0  ;;  %556 = vmatmul.mubr.msk.f32.gmra.mrb[10].mxu1 %vm166_vm2, %v340_v29 }
 0x1e6   :  { %v242_v32 = vpop.f32.mrb[0].mxu1 }
 0x1e7   :  { %v243_v33 = vadd.f32 %v458_v31, %v242_v32  ;;  %v519_v34 = vpop.f32.mrb[1].mxu1 }
 0x1e9   :  { %257 = vst.msk [vmem:[#allocation8] sm:$0xff] %vm256_vm3, %v243_v33 }
 0x1ea   :  { %v247_v35 = vpop.f32.mrb[2].mxu1 }
 0x1eb   :  { %v248_v36 = vadd.f32 %v458_v31, %v247_v35  ;;  %v522_v37 = vpop.f32.mrb[3].mxu1 }
 0x1ed   :  { %258 = vst.msk [vmem:[#allocation8 + $0x8] sm:$0xff] %vm256_vm3, %v248_v36 }
 0x1ee   :  { %v252_v38 = vpop.f32.mrb[4].mxu1 }
 0x1ef   :  { %v253_v39 = vadd.f32 %v458_v31, %v252_v38  ;;  %v525_v40 = vpop.f32.mrb[5].mxu1 }
 0x1f1   :  { %259 = vst.msk [vmem:[#allocation8 + $0x10] sm:$0xff] %vm256_vm3, %v253_v39 }
 0x1f2   :  { %v419_v41 = vpop.f32.mrb[6].mxu1 }
 0x1f3   :  { %v420_v42 = vadd.f32 %v458_v31, %v419_v41  ;;  %v551_v43 = vpop.f32.mrb[7].mxu1 }
 0x1f5   :  { %434 = vst.msk [vmem:[#allocation8 + $0x18] sm:$0xff] %vm256_vm3, %v420_v42 }
 0x1f6   :  { %v424_v44 = vpop.f32.mrb[8].mxu1 }
 0x1f7   :  { %v425_v45 = vadd.f32 %v458_v31, %v424_v44  ;;  %v554_v46 = vpop.f32.mrb[9].mxu1 }
 0x1f9   :  { %435 = vst.msk [vmem:[#allocation8 + $0x20] sm:$0xff] %vm256_vm3, %v425_v45 }
 0x1fa   :  { %v429_v47 = vpop.f32.mrb[10].mxu1 }
 0x1fb   :  { %v430_v48 = vadd.f32 %v458_v31, %v429_v47  ;;  %v557_v49 = vpop.f32.mrb[11].mxu1 }
 0x1fd   :  { %436 = vst.msk [vmem:[#allocation8 + $0x28] sm:$0xff] %vm256_vm3, %v430_v48 }
 0x1fe   :  { %662 = shalt.err (!%p659_p0)
}
 0x1ff   :  { %s663_s6 = scalar_lea.hbm %s831_s4, 768 }
 0x200   :  { %p664_p1 = scmp.ne.s32.totalorder %s831_s4, %s663_s6  ;;  %p667_p2 = scmp.lt.u32.totalorder %s663_s6, %s831_s4 }
 0x202   :  { %p669_p3 = pnand %p667_p2, %p664_p1 }
 0x204   :  { %672 = shalt.err (!%p669_p3)
}
 0x205   :  { %448 = dma.vmem_to_hbm [thread:$0]  %s443_s26, 768, %s831_s4, [#allocation4], %s681_s27, %s681_s27, %s682_s28  }
 0x206   :  { %677 = dma.done.wait [#allocation4], 768  }
 0x207   :  { %678 = vsyncadd [#allocation4], 4294966528 }
 0x208   :  { %452 = vsyncpa [#allocation3], 1 }
 0x209   :  { %453 = vsyncpa [#allocation6], 1 }
 0x20a   :  { %454 = vsyncpa [#allocation4], 1 }

</bundles_post_ra>
